<compile_context>
chip_gen: v7x
topology: tpu7x:2x2x1
jax: 0.10.0
libtpu: 0.0.40
codegen_flags: <defaults>
</compile_context>

<pallas_src>
import jax
import jax.numpy as jnp
from jax import lax
from jax.experimental import pallas as pl
from jax.experimental.pallas import tpu as pltpu

_BN_EPS = 1e-5
_NEG_SLOPE = 0.2


def _round_up(v, m):
    return ((v + m - 1) // m) * m


# ----------------------------------------------------------------------------- kernel ------


def _fc_bn_lrelu_kernel(x_ref, w_ref, p_ref, o_ref):
    """x_ref: (B, tk) bf16; w_ref: (tk, tn) bf16; p_ref: (2, tn) f32 = [gamma; beta];
    o_ref: (B, tn) f32 — K-resident output block used directly as the accumulator."""
    k = pl.program_id(1)
    nk = pl.num_programs(1)

    @pl.when(k == 0)
    def _init():
        o_ref[...] = jnp.zeros_like(o_ref)

    # Canonical (B, tk) x (tk, tn) matmul; bf16 operands, f32 accumulation on the MXU.
    o_ref[...] += jnp.dot(x_ref[...], w_ref[...], preferred_element_type=jnp.float32)

    @pl.when(k == nk - 1)
    def _finalize():
        y = o_ref[...]                                               # full batch resident
        mean = jnp.mean(y, axis=0, keepdims=True)                    # (1, tn)
        centered = y - mean
        var = jnp.mean(centered * centered, axis=0, keepdims=True)   # biased var (BN training)
        scale = p_ref[0:1, :] * lax.rsqrt(var + _BN_EPS)             # gamma folded into rsqrt
        y_bn = centered * scale + p_ref[1:2, :]
        o_ref[...] = jnp.where(y_bn >= 0, y_bn, _NEG_SLOPE * y_bn).astype(o_ref.dtype)


# --------------------------------------------------------------------- tile / VMEM policy --


def _vmem_budget_bytes():
    """~80% of physical VMEM (generation-aware); conservative fallback works everywhere."""
    cap = 64 * 1024 * 1024
    try:
        info = pltpu.get_tpu_info()
        cap = int(getattr(info, "vmem_capacity_bytes", cap))
    except Exception:
        pass
    cap = max(cap, 64 * 1024 * 1024)
    return (cap * 4) // 5            # 128 MiB -> ~102 MiB (v5e/v6e), 64 MiB -> ~51 MiB (v7x)


def _block_bytes(B, tk, tn, x_bytes, w_bytes):
    # Double-buffered input blocks + double-buffered f32 output/accumulator block.
    return (2 * B * tk * x_bytes        # x (B, tk)
            + 2 * tk * tn * w_bytes     # W^T (tk, tn)
            + 2 * 2 * tn * 4            # [gamma; beta]
            + 2 * B * tn * 4)           # f32 output / accumulator


def _largest_div_tile(dim_pad, cap):
    """Largest multiple-of-128 divisor of dim_pad that is <= cap (falls back to 128)."""
    t = (max(128, min(cap, dim_pad)) // 128) * 128
    while t > 128:
        if dim_pad % t == 0:
            return t
        t -= 128
    return 128


def _select_tiles(B, K_pad, N_pad, budget, x_bytes, w_bytes):
    # Keep >= 2 N-tiles whenever N_pad >= 256 so v7x's two TensorCores both get work on the
    # "parallel" N axis (negligible cost on single-TC v5e/v6e).
    tn_cap = N_pad if N_pad < 256 else min(N_pad // 2, 1024)
    tn = _largest_div_tile(N_pad, tn_cap)

    # tk: largest 128-multiple divisor of K_pad (capped at 4096) whose double-buffered
    # working set fits the budget -> few, large weight DMAs (HBM-roofline friendly).
    t = (min(K_pad, 4096) // 128) * 128
    tk = 128
    while t >= 128:
        if K_pad % t == 0 and _block_bytes(B, t, tn, x_bytes, w_bytes) <= budget:
            tk = t
            break
        t -= 128
    return tn, tk


# ------------------------------------------------------------------------------ wrappers --


def prepare_fc_bn_params(weight, bias, gamma, beta, compute_dtype=jnp.bfloat16):
    """One-time parameter prep (run at init, NOT per forward call): pad, transpose, cast."""
    nodes, in_nodes = weight.shape

    # bias is accepted for nn.Linear interface parity but intentionally unused:
    # training-mode BatchNorm subtracts the per-feature batch mean, which cancels any
    # additive per-feature bias exactly.
    del bias

    K_pad = _round_up(in_nodes, 128)
    N_pad = _round_up(nodes, 128)

    w = jnp.asarray(weight, jnp.float32)
    w = jnp.pad(w, ((0, N_pad - nodes), (0, K_pad - in_nodes)))
    w_t = jnp.transpose(w).astype(compute_dtype)          # (K_pad, N_pad): canonical RHS layout

    g = jnp.pad(jnp.asarray(gamma, jnp.float32), (0, N_pad - nodes))
    b = jnp.pad(jnp.asarray(beta, jnp.float32), (0, N_pad - nodes))
    params = jnp.stack([g, b], axis=0)                    # (2, N_pad) f32, single DMA

    return {
        "w_t": w_t,
        "params": params,
        "in_nodes": in_nodes,
        "nodes": nodes,
        "K_pad": K_pad,
        "N_pad": N_pad,
        "compute_dtype": compute_dtype,
    }


def fc_layer_bn_apply(x, prep):
    """x: (B, in_nodes).  Returns (B, nodes) f32 = LeakyReLU(BatchNorm1d_train(Linear(x)))."""
    # TODO(synk): BatchNorm1d running_mean/running_var momentum update (unbiased var) is not
    # produced; only the forward activation (training-mode batch stats) is computed.
    # TODO(synk): PyTorch raises for batch size 1 in training-mode BN; here B==1 would yield
    # var=0 and output LeakyReLU(beta) instead of erroring.
    B, in_nodes = x.shape
    assert in_nodes == prep["in_nodes"]
    K_pad, N_pad, nodes = prep["K_pad"], prep["N_pad"], prep["nodes"]
    cdt = prep["compute_dtype"]

    if K_pad != in_nodes:
        x = jnp.pad(x, ((0, 0), (0, K_pad - in_nodes)))
    x = x.astype(cdt)

    x_bytes = jnp.dtype(cdt).itemsize
    w_bytes = jnp.dtype(prep["w_t"].dtype).itemsize
    budget = _vmem_budget_bytes()
    tn, tk = _select_tiles(B, K_pad, N_pad, budget, x_bytes, w_bytes)

    grid = (N_pad // tn, K_pad // tk)

    out = pl.pallas_call(
        _fc_bn_lrelu_kernel,
        out_shape=jax.ShapeDtypeStruct((B, N_pad), jnp.float32),
        grid=grid,
        in_specs=[
            pl.BlockSpec((B, tk), lambda j, k: (0, k)),     # x: full batch, K-tile
            pl.BlockSpec((tk, tn), lambda j, k: (k, j)),    # W^T: (K-tile, N-tile)
            pl.BlockSpec((2, tn), lambda j, k: (0, j)),     # [gamma; beta]
        ],
        out_specs=pl.BlockSpec((B, tn), lambda j, k: (0, j)),  # resident across K (accumulator)
        compiler_params=pltpu.CompilerParams(
            dimension_semantics=("parallel", "arbitrary"),  # N across TCs; K is the reduction
            vmem_limit_bytes=budget,
        ),
    )(x, prep["w_t"], prep["params"])

    return out[:, :nodes] if N_pad != nodes else out


def fc_layer_bn(x, weight, bias, gamma, beta):
    """One-shot convenience wrapper (hoist prepare_fc_bn_params for repeated forward calls)."""
    return fc_layer_bn_apply(x, prepare_fc_bn_params(weight, bias, gamma, beta))


# ----------------------------------------------------------------------------- reference --


def _reference(x, weight, bias, gamma, beta):
    y = x @ weight.T + bias
    mean = jnp.mean(y, axis=0, keepdims=True)
    var = jnp.mean((y - mean) ** 2, axis=0, keepdims=True)
    y_bn = (y - mean) / jnp.sqrt(var + _BN_EPS) * gamma + beta
    return jnp.where(y_bn >= 0, y_bn, _NEG_SLOPE * y_bn)


if __name__ == "__main__":
    key = jax.random.PRNGKey(0)

    def run_case(case_key, B, in_nodes, nodes):
        k_x, k_w, k_b, k_g, k_be = jax.random.split(case_key, 5)
        bound = float(in_nodes) ** -0.5
        x = jax.random.normal(k_x, (B, in_nodes), dtype=jnp.float32)
        weight = jax.random.uniform(k_w, (nodes, in_nodes), jnp.float32, -bound, bound)
        bias = jax.random.uniform(k_b, (nodes,), jnp.float32, -bound, bound)
        gamma = jax.random.uniform(k_g, (nodes,), jnp.float32, 0.5, 1.5)
        beta = 0.1 * jax.random.normal(k_be, (nodes,), dtype=jnp.float32)

        prep = prepare_fc_bn_params(weight, bias, gamma, beta)   # one-time parameter prep
        out = jax.block_until_ready(fc_layer_bn_apply(x, prep))
        ref = _reference(x, weight, bias, gamma, beta)
        assert out.shape == (B, nodes)
        err = float(jnp.max(jnp.abs(out - ref)))
        assert jnp.allclose(out, ref, atol=2e-2, rtol=2e-2), f"max |err| = {err}"

    k1, k2 = jax.random.split(key)
    run_case(k1, 8, 32, 32)      # tiny module-like shape (padded to a single 128x128 tile)
    run_case(k2, 16, 384, 384)   # multi-tile N path: tn=128 -> 3 parallel N tiles, tk=384 (1 K step)
    print("KERNEL_OK")
</pallas_src>

<mosaic_0001>
module attributes {stable_mosaic.version = 11 : i64} {
  func.func @_fc_bn_lrelu_kernel(%arg0: i32, %arg1: i32, %arg2: memref<8x128xbf16, #tpu.memory_space<vmem>>, %arg3: memref<128x128xbf16, #tpu.memory_space<vmem>>, %arg4: memref<2x128xf32, #tpu.memory_space<vmem>>, %arg5: memref<8x128xf32, #tpu.memory_space<vmem>>) attributes {dimension_semantics = [#tpu.dimension_semantics<parallel>, #tpu.dimension_semantics<arbitrary>], iteration_bounds = array<i64: 1, 1>, scalar_prefetch = 0 : i64, scratch_operands = 0 : i64, tpu.core_type = #tpu.core_type<tc>, window_params = [{transform_indices = @transform_0, window_bounds = array<i64: 8, 128>}, {transform_indices = @transform_1, window_bounds = array<i64: 128, 128>}, {transform_indices = @transform_2, window_bounds = array<i64: 2, 128>}, {transform_indices = @transform_3, window_bounds = array<i64: 8, 128>}]} {
    %c0_i32 = arith.constant 0 : i32
    %0 = arith.cmpi eq, %arg1, %c0_i32 : i32
    %1 = arith.extui %0 : i1 to i32
    %c0_i32_0 = arith.constant 0 : i32
    %2 = arith.cmpi ne, %1, %c0_i32_0 : i32
    scf.if %2 {
      %cst_10 = arith.constant 0.000000e+00 : f32
      %12 = vector.broadcast %cst_10 : f32 to vector<8x128xf32>
      %c0_11 = arith.constant 0 : index
      %c0_12 = arith.constant 0 : index
      %13 = vector.load %arg5[%c0_11, %c0_12] : memref<8x128xf32, #tpu.memory_space<vmem>>, vector<8x128xf32>
      tpu.vector_store %arg5[%c0_11, %c0_12], %12 {strides = array<i32>} : memref<8x128xf32, #tpu.memory_space<vmem>>, vector<8x128xf32>,
    } else {
    }
    %c0 = arith.constant 0 : index
    %c0_1 = arith.constant 0 : index
    %3 = vector.load %arg5[%c0, %c0_1] : memref<8x128xf32, #tpu.memory_space<vmem>>, vector<8x128xf32>
    %c0_2 = arith.constant 0 : index
    %c0_3 = arith.constant 0 : index
    %4 = vector.load %arg2[%c0_2, %c0_3] : memref<8x128xbf16, #tpu.memory_space<vmem>>, vector<8x128xbf16>
    %c0_4 = arith.constant 0 : index
    %c0_5 = arith.constant 0 : index
    %5 = vector.load %arg3[%c0_4, %c0_5] : memref<128x128xbf16, #tpu.memory_space<vmem>>, vector<128x128xbf16>
    %cst = arith.constant dense<0.000000e+00> : vector<8x128xf32>
    %6 = tpu.matmul %4, %5, %cst {dimension_numbers = #tpu.dot_dimension_numbers<[1], [0], [0], [1], [0, 0, 1, 1], [], []>} : vector<8x128xbf16>, vector<128x128xbf16>, vector<8x128xf32> -> vector<8x128xf32>
    %7 = arith.addf %3, %6 : vector<8x128xf32>
    %c0_6 = arith.constant 0 : index
    %c0_7 = arith.constant 0 : index
    %8 = vector.load %arg5[%c0_6, %c0_7] : memref<8x128xf32, #tpu.memory_space<vmem>>, vector<8x128xf32>
    tpu.vector_store %arg5[%c0_6, %c0_7], %7 {strides = array<i32>} : memref<8x128xf32, #tpu.memory_space<vmem>>, vector<8x128xf32>,
    %c0_i32_8 = arith.constant 0 : i32
    %9 = arith.cmpi eq, %arg1, %c0_i32_8 : i32
    %10 = arith.extui %9 : i1 to i32
    %c0_i32_9 = arith.constant 0 : i32
    %11 = arith.cmpi ne, %10, %c0_i32_9 : i32
    scf.if %11 {
      %c0_10 = arith.constant 0 : index
      %c0_11 = arith.constant 0 : index
      %12 = vector.load %arg5[%c0_10, %c0_11] : memref<8x128xf32, #tpu.memory_space<vmem>>, vector<8x128xf32>
      %cst_12 = arith.constant dense<0.000000e+00> : vector<128xf32>
      %13 = vector.multi_reduction <add>, %12, %cst_12 [0] : vector<8x128xf32> to vector<128xf32>
      %14 = vector.shape_cast %13 : vector<128xf32> to vector<1x128xf32>
      %cst_13 = arith.constant 8.000000e+00 : f32
      %15 = vector.broadcast %cst_13 : f32 to vector<1x128xf32>
      %16 = arith.divf %14, %15 : vector<1x128xf32>
      %17 = vector.broadcast %16 : vector<1x128xf32> to vector<8x128xf32>
      %18 = arith.subf %12, %17 : vector<8x128xf32>
      %19 = arith.mulf %18, %18 : vector<8x128xf32>
      %cst_14 = arith.constant dense<0.000000e+00> : vector<128xf32>
      %20 = vector.multi_reduction <add>, %19, %cst_14 [0] : vector<8x128xf32> to vector<128xf32>
      %21 = vector.shape_cast %20 : vector<128xf32> to vector<1x128xf32>
      %cst_15 = arith.constant 8.000000e+00 : f32
      %22 = vector.broadcast %cst_15 : f32 to vector<1x128xf32>
      %23 = arith.divf %21, %22 : vector<1x128xf32>
      %c0_16 = arith.constant 0 : index
      %c0_17 = arith.constant 0 : index
      %24 = vector.load %arg4[%c0_16, %c0_17] : memref<2x128xf32, #tpu.memory_space<vmem>>, vector<1x128xf32>
      %cst_18 = arith.constant 9.99999974E-6 : f32
      %25 = vector.broadcast %cst_18 : f32 to vector<1x128xf32>
      %26 = arith.addf %23, %25 : vector<1x128xf32>
      %27 = math.rsqrt %26 : vector<1x128xf32>
      %28 = arith.mulf %24, %27 : vector<1x128xf32>
      %29 = vector.broadcast %28 : vector<1x128xf32> to vector<8x128xf32>
      %30 = arith.mulf %18, %29 : vector<8x128xf32>
      %c1 = arith.constant 1 : index
      %c0_19 = arith.constant 0 : index
      %31 = vector.load %arg4[%c1, %c0_19] : memref<2x128xf32, #tpu.memory_space<vmem>>, vector<1x128xf32>
      %32 = vector.broadcast %31 : vector<1x128xf32> to vector<8x128xf32>
      %33 = arith.addf %30, %32 : vector<8x128xf32>
      %cst_20 = arith.constant 0.000000e+00 : f32
      %34 = vector.broadcast %cst_20 : f32 to vector<8x128xf32>
      %35 = arith.cmpf oge, %33, %34 : vector<8x128xf32>
      %cst_21 = arith.constant 2.000000e-01 : f32
      %36 = vector.broadcast %cst_21 : f32 to vector<8x128xf32>
      %37 = arith.mulf %36, %33 : vector<8x128xf32>
      %38 = arith.select %35, %33, %37 : vector<8x128xi1>, vector<8x128xf32>
      %c0_22 = arith.constant 0 : index
      %c0_23 = arith.constant 0 : index
      %39 = vector.load %arg5[%c0_22, %c0_23] : memref<8x128xf32, #tpu.memory_space<vmem>>, vector<8x128xf32>
      tpu.vector_store %arg5[%c0_22, %c0_23], %38 {strides = array<i32>} : memref<8x128xf32, #tpu.memory_space<vmem>>, vector<8x128xf32>,
    } else {
    }
    return
  }
  func.func @transform_0(%arg0: i32, %arg1: i32) -> (i32, i32) {
    %c0_i32 = arith.constant 0 : i32
    %c0_i32_0 = arith.constant 0 : i32
    return %c0_i32, %arg1 : i32, i32
  }
  func.func @transform_1(%arg0: i32, %arg1: i32) -> (i32, i32) {
    %c0_i32 = arith.constant 0 : i32
    return %arg1, %arg0 : i32, i32
  }
  func.func @transform_2(%arg0: i32, %arg1: i32) -> (i32, i32) {
    %c0_i32 = arith.constant 0 : i32
    %c0_i32_0 = arith.constant 0 : i32
    return %c0_i32, %arg0 : i32, i32
  }
  func.func @transform_3(%arg0: i32, %arg1: i32) -> (i32, i32) {
    %c0_i32 = arith.constant 0 : i32
    %c0_i32_0 = arith.constant 0 : i32
    return %c0_i32, %arg0 : i32, i32
  }
}

</mosaic_0001>

<bundles_post_ra>
// kernel: tpu_custom_call.1
= control target key start
LH: loop header
LB: loop body
LE: loop exit
PB: predicated region body
PF: predicated region fallthrough
CT: control target
= control target key end

     0   :  { %8 = vsyncpa [#allocation3], 0  ;;  %s414_s0 = inlined_call_operand.hbm [shape: bf16[8,128], index: 0, kind: input, shape index: {}]   ;;  %s415_s1 = inlined_call_operand.hbm [shape: bf16[128,128], index: 1, kind: input, shape index: {}]   ;;  %s416_s2 = inlined_call_operand.vmem [shape: f32[2,128], index: 2, kind: input, shape index: {}]   ;;  %s417_s3 = inlined_call_operand.hbm [shape: f32[8,128], index: 3, kind: output, shape index: {}]  }
   0x1   :  { %9 = vsyncpa [#allocation6], 0 }
   0x2   :  { %10 = vsyncpa [#allocation4], 0  ;;  %s338_s12 = smov [#allocation2]   ;;  %s339_s14 = smov [#allocation5]  }
   0x3   :  { %s17_s13 = sshll.u32 %s338_s12, 4  ;;  %s26_s15 = sshll.u32 %s339_s14, 4  ;;  %s18_s13 = int_to_ptr.vmem [resolvable:$true] %s17_s13  ;;  %s365_s15 = int_to_ptr.vmem [resolvable:$true] %s26_s15 }
   0x4   :  { %s266_s18 = scalar_lea.hbm %s414_s0, 64 }
   0x5   :  { %p267_p0 = scmp.ne.s32.totalorder %s414_s0, %s266_s18  ;;  %p270_p1 = scmp.lt.u32.totalorder %s266_s18, %s414_s0 }
   0x7   :  { %p272_p2 = pnand %p270_p1, %p267_p0 }
   0x9   :  { %275 = shalt.err (!%p272_p2)
}
   0xa   :  { %s276_s23 = scalar_lea.vmem %s18_s13, 64  ;;  %p281_p4 = scmp.lt.s32.totalorder %s18_s13, %s18_s13 }
   0xb   :  { %p277_p3 = scmp.ne.s32.totalorder %s18_s13, %s276_s23  ;;  %p282_p5 = scmp.lt.s32.totalorder %s276_s23, %s276_s23 }
   0xd   :  { %p283_p6 = por %p282_p5, %p281_p4 }
   0xf   :  { %p284_p7 = pnand %p283_p6, %p277_p3 }
  0x11   :  { %287 = shalt.err (!%p284_p7)
}
  0x12   :  { %20 = dma.hbm_to_vmem [thread:$0]  %s414_s0, 64, %s18_s13, [#allocation3]  }
  0x13   :  { %s288_s28 = scalar_lea.hbm %s415_s1, 1024 }
  0x14   :  { %p289_p8 = scmp.ne.s32.totalorder %s415_s1, %s288_s28  ;;  %p292_p9 = scmp.lt.u32.totalorder %s288_s28, %s415_s1 }
  0x16   :  { %p294_p10 = pnand %p292_p9, %p289_p8 }
  0x18   :  { %297 = shalt.err (!%p294_p10)
}
  0x19   :  { %s298_s6 = scalar_lea.vmem %s365_s15, 1024  ;;  %p303_p12 = scmp.lt.s32.totalorder %s365_s15, %s365_s15 }
  0x1a   :  { %p299_p11 = scmp.ne.s32.totalorder %s365_s15, %s298_s6  ;;  %p304_p13 = scmp.lt.s32.totalorder %s298_s6, %s298_s6 }
  0x1c   :  { %p305_p0 = por %p304_p13, %p303_p12 }
  0x1e   :  { %p306_p1 = pnand %p305_p0, %p299_p11 }
  0x20   :  { %309 = shalt.err (!%p306_p1)
}
  0x21   :  { %s340_s0 = smov 64   ;;  %s341_s7 = smov 4  }
  0x22   :  { %32 = dma.hbm_to_vmem [thread:$0]  %s415_s1, 1024, %s365_s15, [#allocation6], %s340_s0, %s340_s0, %s341_s7  }
  0x23   :  { %332 = dma.done.wait [#allocation3], 64  }
  0x24   :  { %333 = vsyncadd [#allocation3], 4294967232 }
  0x25   :  { %334 = dma.done.wait [#allocation6], 1024  }
  0x26   :  { %335 = vsyncadd [#allocation6], 4294966272  ;;  %v342_v0 = vmov 0.0   ;;  %vm343_vm0 = vmmov 0   ;;  %v256_v1 = vld [vmem:[#allocation5] sm:$0xff]   ;;  %v257_v2 = vld [vmem:[#allocation5 + $0x8] sm:$0xff]   ;;  %v180_v31 = vlaneseq }
  0x27   :  { %229 = vmatprep.subr.bf16.mxu0 %v342_v0  ;;  %245 = vmatprep.mubr.msk.bf16.mxu0 %vm343_vm0, %v342_v0  ;;  %v258_v3 = vld [vmem:[#allocation5 + $0x10] sm:$0xff]   ;;  %v259_v4 = vld [vmem:[#allocation5 + $0x18] sm:$0xff]   ;;  %v260_v5 = vld [vmem:[#allocation5 + $0x20] sm:$0xff]   ;;  %s344_s13 = smov [#allocation7]  }
  0x28   :  { %230 = vmatpush3.bf16.msra.mxu0 %v256_v1  ;;  %v261_v6 = vld [vmem:[#allocation5 + $0x28] sm:$0xff]   ;;  %v262_v7 = vld [vmem:[#allocation5 + $0x30] sm:$0xff]   ;;  %v263_v8 = vld [vmem:[#allocation5 + $0x38] sm:$0xff]   ;;  %v181_v32 = vshrl.u32 %v180_v31, 7  ;;  %s201_s14 = sshll.u32 %s344_s13, 4  ;;  %s202_s14 = int_to_ptr.vmem [resolvable:$true] %s201_s14 }
  0x29   :  { %231 = vmatprep.subr.bf16.mxu0 %v342_v0  ;;  %v48_v9 = vld [vmem:[#allocation2] sm:$0xf]  ;;  %s310_s15 = scalar_lea.vmem %s202_s14, 128  ;;  %p315_p3 = scmp.lt.s32.totalorder %s202_s14, %s202_s14 }
  0x2a   :  { %v176_v33 = vld [vmem:[%s416_s2] sm:$0x1]  ;;  %v182_v34 = vsub.s32 0, %v181_v32  ;;  %v219_v38 = vld [vmem:[%s416_s2 + $0x1] ss:$0 sm:$0xff]  ;;  %p311_p2 = scmp.ne.s32.totalorder %s202_s14, %s310_s15  ;;  %p316_p4 = scmp.lt.s32.totalorder %s310_s15, %s310_s15 }
  0x2c   :  { %232 = vmatpush3.bf16.msra.mxu0 %v257_v2  ;;  %p317_p5 = por %p316_p4, %p315_p3 }
  0x2d   :  { %233 = vmatprep.subr.bf16.mxu0 %v342_v0 }
  0x2e   :  { %p318_p6 = pnand %p317_p5, %p311_p2 }
  0x30   :  { %234 = vmatpush3.bf16.msra.mxu0 %v258_v3 }
  0x31   :  { %235 = vmatprep.subr.bf16.mxu0 %v342_v0 }
  0x34   :  { %236 = vmatpush3.bf16.msra.mxu0 %v259_v4 }
  0x35   :  { %237 = vmatprep.subr.bf16.mxu0 %v342_v0 }
  0x38   :  { %238 = vmatpush3.bf16.msra.mxu0 %v260_v5 }
  0x39   :  { %239 = vmatprep.subr.bf16.mxu0 %v342_v0 }
  0x3c   :  { %240 = vmatpush3.bf16.msra.mxu0 %v261_v6 }
  0x3d   :  { %241 = vmatprep.subr.bf16.mxu0 %v342_v0 }
  0x40   :  { %242 = vmatpush3.bf16.msra.mxu0 %v262_v7 }
  0x41   :  { %243 = vmatprep.subr.bf16.mxu0 %v342_v0 }
  0x44   :  { %244 = vmatpush3.bf16.msra.mxu0 %v263_v8 }
  0x47   :  { %246 = vmatmul.mubr.bf16.vlgmr.msra.gmra.mrb[0].mxu0 %v48_v9 }
 0x11a   :  { %v147_v10 = vpop.f32.mrb[0].mxu0 }
 0x11b   :  { %v247_v11 = vpop.f32.mrb[1].mxu0  ;;  %v159_v14 = vrot.slane %v147_v10, 4 }
 0x11c   :  { %v150_v12 = vpop.f32.mrb[2].mxu0 }
 0x11d   :  { %v248_v13 = vpop.f32.mrb[3].mxu0  ;;  %v160_v15 = vadd.f32 %v159_v14, %v147_v10 }
 0x11f   :  { %v161_v16 = vrot.slane %v160_v15, 2 }
 0x121   :  { %v162_v17 = vadd.f32 %v161_v16, %v160_v15 }
 0x123   :  { %v163_v18 = vrot.slane %v162_v17, 1 }
 0x125   :  { %v164_v19 = vadd.f32 %v163_v18, %v162_v17 }
 0x127   :  { %v166_v20 = vmul.f32 0.125, %v164_v19 }
 0x129   :  { %v167_v21 = vsub.f32 %v147_v10, %v166_v20 }
 0x12b   :  { %v168_v22 = vmul.f32 %v167_v21, %v167_v21 }
 0x12d   :  { %v169_v23 = vrot.slane %v168_v22, 4 }
 0x12f   :  { %v170_v24 = vadd.f32 %v169_v23, %v168_v22 }
 0x131   :  { %v171_v25 = vrot.slane %v170_v24, 2 }
 0x133   :  { %v172_v26 = vadd.f32 %v171_v25, %v170_v24 }
 0x135   :  { %v173_v27 = vrot.slane %v172_v26, 1 }
 0x137   :  { %v174_v28 = vadd.f32 %v173_v27, %v172_v26 }
 0x139   :  { %v175_v29 = vmul.f32 0.125, %v174_v28 }
 0x13b   :  { %v177_v30 = vadd.f32 1e-05, %v175_v29 }
 0x13d   :  { %264 = vrsqrt.f32 %v177_v30 }
 0x147   :  { %v265_v35 = vpop.eup %264 }
 0x148   :  { %v179_v36 = vmul.f32 %v265_v35, %v176_v33 }
 0x14a   :  { %v183_v37 = vrot.slane %v179_v36, %v182_v34 }
 0x14c   :  { %v184_v39 = vmul.f32 %v183_v37, %v167_v21 }
 0x14e   :  { %v190_v40 = vadd.f32 %v219_v38, %v184_v39 }
 0x150   :  { %vm191_vm1 = vcmp.ge.f32.partialorder %v190_v40, 0.0  ;;  %v192_v41 = vmul.f32 0.2, %v190_v40 }
 0x152   :  { %v193_v42 = vsel %vm191_vm1, %v190_v40, %v192_v41 }
 0x153   :  { %194 = vst [vmem:[#allocation7] sm:$0xff] %v193_v42 }
 0x154   :  { %321 = shalt.err (!%p318_p6)
}
 0x155   :  { %s322_s2 = scalar_lea.hbm %s417_s3, 128 }
 0x156   :  { %p323_p7 = scmp.ne.s32.totalorder %s417_s3, %s322_s2  ;;  %p326_p8 = scmp.lt.u32.totalorder %s322_s2, %s417_s3 }
 0x158   :  { %p328_p9 = pnand %p326_p8, %p323_p7 }
 0x15a   :  { %331 = shalt.err (!%p328_p9)
}
 0x15b   :  { %204 = dma.vmem_to_hbm [thread:$0]  %s202_s14, 128, %s417_s3, [#allocation4]  }
 0x15c   :  { %336 = dma.done.wait [#allocation4], 128  }
 0x15d   :  { %337 = vsyncadd [#allocation4], 4294967168 }
 0x15e   :  { %208 = vsyncpa [#allocation3], 1 }
 0x15f   :  { %209 = vsyncpa [#allocation6], 1 }
 0x160   :  { %210 = vsyncpa [#allocation4], 1 }

</bundles_post_ra>
